<compile_context>
chip_gen: v7x
topology: tpu7x:2x2x1
jax: 0.10.0
libtpu: 0.0.40
codegen_flags: <defaults>
</compile_context>

<pallas_src>
import functools

import jax
import jax.numpy as jnp
from jax.experimental import pallas as pl
from jax.experimental.pallas import tpu as pltpu


# ----------------------------------------------------------------------------
# Fused Pallas kernel: convs -> mean-pool -> MLP, all VMEM-resident
# ----------------------------------------------------------------------------
def _fused_gcn_encoder_kernel(*refs, n_conv, n_mlp):
    # refs layout:
    #   [a_hat, x, pool,
    #    conv_w0, conv_b0, ..., conv_w{n_conv-1}, conv_b{n_conv-1},
    #    mlp_w0,  mlp_b0,  ..., mlp_w{n_mlp-1},  mlp_b{n_mlp-1},
    #    out]
    a_ref, x_ref, pool_ref = refs[0], refs[1], refs[2]
    idx = 3
    conv_params = []
    for _ in range(n_conv):
        conv_params.append((refs[idx], refs[idx + 1]))
        idx += 2
    mlp_params = []
    for _ in range(n_mlp):
        mlp_params.append((refs[idx], refs[idx + 1]))
        idx += 2
    o_ref = refs[idx]

    a = a_ref[...]                       # (N_pad, N_pad) bf16
    h = x_ref[...]                       # (N_pad, F_pad)  bf16

    # GCN conv stack: ReLU after every conv except the last one.
    for i, (w_ref, b_ref) in enumerate(conv_params):
        xw = jnp.dot(h, w_ref[...], preferred_element_type=jnp.float32)
        out = jnp.dot(a, xw.astype(jnp.bfloat16),
                      preferred_element_type=jnp.float32)
        out = out + b_ref[...]           # bias + ReLU in f32 (v5e-safe)
        if i < n_conv - 1:
            out = jnp.maximum(out, 0.0)
        h = out.astype(jnp.bfloat16)     # VMEM-resident intermediate

    # global_mean_pool as a matmul: (B_pad, N_pad) @ (N_pad, C_pad)
    out = jnp.dot(pool_ref[...], h, preferred_element_type=jnp.float32)

    # mol_mlp: Linear+ReLU ... Linear (no ReLU on the last layer)
    for i, (w_ref, b_ref) in enumerate(mlp_params):
        out = jnp.dot(out.astype(jnp.bfloat16), w_ref[...],
                      preferred_element_type=jnp.float32)
        out = out + b_ref[...]
        if i < n_mlp - 1:
            out = jnp.maximum(out, 0.0)

    o_ref[...] = out.astype(o_ref.dtype)  # lane-dense (B_pad, nout_pad) store


# ----------------------------------------------------------------------------
# Padding helpers
# ----------------------------------------------------------------------------
def _round_up(v, m):
    return ((v + m - 1) // m) * m


def _pad2(x, rows, cols):
    r, c = x.shape
    return jnp.pad(x, ((0, rows - r), (0, cols - c)))


# ----------------------------------------------------------------------------
# Forward pass wrapper (mirrors GCNEncoder.forward)
# ----------------------------------------------------------------------------
def gcn_encoder_forward(params, x, a_hat, pool_mat):
    n_conv = len(params["convs"])
    n_mlp = len(params["mlp"])

    num_nodes, num_feat = x.shape
    num_graphs = pool_mat.shape[0]
    nout = params["mlp"][-1][0].shape[1]

    n_pad = _round_up(num_nodes, 128)
    f_pad = _round_up(num_feat, 128)
    b_pad = _round_up(num_graphs, 8)
    nout_pad = _round_up(nout, 128)

    # Cast heavy operands to bf16, pad everything to MXU/lane-friendly shapes.
    operands = [
        _pad2(a_hat, n_pad, n_pad).astype(jnp.bfloat16),
        _pad2(x, n_pad, f_pad).astype(jnp.bfloat16),
        _pad2(pool_mat, b_pad, n_pad).astype(jnp.bfloat16),
    ]
    for (w, b) in params["convs"] + params["mlp"]:
        cin_p = _round_up(w.shape[0], 128)
        cout_p = _round_up(w.shape[1], 128)
        operands.append(_pad2(w, cin_p, cout_p).astype(jnp.bfloat16))
        operands.append(_pad2(b, 1, cout_p).astype(jnp.float32))

    # Advisory cost estimate for XLA scheduling of the surrounding glue.
    flops = 0
    for (w, _) in params["convs"]:
        cin_p = _round_up(w.shape[0], 128)
        cout_p = _round_up(w.shape[1], 128)
        flops += 2 * n_pad * cin_p * cout_p        # X @ W
        flops += 2 * n_pad * n_pad * cout_p        # A_hat @ (XW)
    flops += 2 * b_pad * n_pad * _round_up(params["convs"][-1][0].shape[1], 128)
    for (w, _) in params["mlp"]:
        flops += 2 * b_pad * _round_up(w.shape[0], 128) * _round_up(w.shape[1], 128)
    bytes_accessed = sum(int(op.size) * op.dtype.itemsize for op in operands)
    bytes_accessed += b_pad * nout_pad * 4

    kernel = functools.partial(_fused_gcn_encoder_kernel,
                               n_conv=n_conv, n_mlp=n_mlp)

    out_pad = pl.pallas_call(
        kernel,
        out_shape=jax.ShapeDtypeStruct((b_pad, nout_pad), jnp.float32),
        in_specs=[pl.BlockSpec(memory_space=pltpu.MemorySpace.VMEM)
                  for _ in operands],
        out_specs=pl.BlockSpec(memory_space=pltpu.MemorySpace.VMEM),
        cost_estimate=pl.CostEstimate(flops=flops, transcendentals=0,
                                      bytes_accessed=bytes_accessed),
    )(*operands)

    # Strip padding (rows = real graphs, cols = real output channels).
    # NOTE: self.ln (LayerNorm) is defined in __init__ but unused in forward.
    return out_pad[:num_graphs, :nout]


# ----------------------------------------------------------------------------
# Graph preprocessing glue (plain JAX)
# ----------------------------------------------------------------------------
def build_normalized_adjacency(edge_index, num_nodes):
    """A_hat = D^-1/2 (A + I) D^-1/2 as a dense (N, N) matrix.

    Duplicate edges are summed (matching torch_geometric's gcn_norm behavior).
    """
    src, dst = edge_index[0], edge_index[1]
    a = jnp.zeros((num_nodes, num_nodes), jnp.float32)
    # message flows src -> dst, i.e. row = target, col = source
    a = a.at[dst, src].add(1.0)
    a_hat = a + jnp.eye(num_nodes, dtype=jnp.float32)
    deg = a_hat.sum(axis=1)
    d_inv_sqrt = 1.0 / jnp.sqrt(deg)  # self-loops guarantee deg >= 1
    return d_inv_sqrt[:, None] * a_hat * d_inv_sqrt[None, :]


def build_pool_matrix(batch, num_graphs, num_nodes):
    """(B, N) matrix with 1/count entries -> global_mean_pool as a matmul."""
    onehot = (batch[None, :] == jnp.arange(num_graphs)[:, None]).astype(jnp.float32)
    counts = jnp.maximum(onehot.sum(axis=1, keepdims=True), 1.0)
    return onehot / counts


# ----------------------------------------------------------------------------
# Parameter construction (deterministic, synthetic)
# ----------------------------------------------------------------------------
def init_params(key, num_node_features, n_layers_conv, n_layers_out,
                nout, nhid, graph_hidden_channels):
    params = {"convs": [], "mlp": []}
    dims_conv = [num_node_features] + [graph_hidden_channels] * n_layers_conv
    for i in range(n_layers_conv):
        key, k = jax.random.split(key)
        fan_in, fan_out = dims_conv[i], dims_conv[i + 1]
        scale = jnp.sqrt(2.0 / (fan_in + fan_out))  # glorot-ish
        w = jax.random.normal(k, (fan_in, fan_out), jnp.float32) * scale
        b = jnp.zeros((1, fan_out), jnp.float32)
        params["convs"].append((w, b))

    mlp_dims = [graph_hidden_channels] + [nhid] * (n_layers_out - 1) + [nout]
    for i in range(n_layers_out):
        key, k1, k2 = jax.random.split(key, 3)
        fan_in, fan_out = mlp_dims[i], mlp_dims[i + 1]
        bound = 1.0 / jnp.sqrt(fan_in)
        w = jax.random.uniform(k1, (fan_in, fan_out), jnp.float32, -bound, bound)
        b = jax.random.uniform(k2, (1, fan_out), jnp.float32, -bound, bound)
        params["mlp"].append((w, b))
    return params


# ----------------------------------------------------------------------------
# Pure-JAX reference (f32) for a sanity check
# ----------------------------------------------------------------------------
def reference_forward(params, x, a_hat, pool_mat):
    h = x
    n_conv = len(params["convs"])
    for i, (w, b) in enumerate(params["convs"]):
        h = a_hat @ (h @ w) + b
        if i < n_conv - 1:
            h = jnp.maximum(h, 0.0)
    out = pool_mat @ h
    n_mlp = len(params["mlp"])
    for i, (w, b) in enumerate(params["mlp"]):
        out = out @ w + b
        if i < n_mlp - 1:
            out = jnp.maximum(out, 0.0)
    return out


# ----------------------------------------------------------------------------
if __name__ == "__main__":
    # Small synthetic graph batch: 2 graphs x 8 nodes each = 16 nodes.
    num_node_features = 8
    n_layers_conv = 2
    n_layers_out = 2
    nout = 16
    nhid = 32
    graph_hidden_channels = 32

    num_nodes = 16
    num_graphs = 2

    key = jax.random.PRNGKey(0)
    key, kx = jax.random.split(key)
    x = jax.random.normal(kx, (num_nodes, num_node_features), jnp.float32)

    # ring edges within each graph (symmetric), deterministic
    src_list, dst_list = [], []
    for g in range(num_graphs):
        base = g * 8
        for i in range(8):
            a_n = base + i
            b_n = base + (i + 1) % 8
            src_list += [a_n, b_n]
            dst_list += [b_n, a_n]
    edge_index = jnp.array([src_list, dst_list], dtype=jnp.int32)
    batch = jnp.repeat(jnp.arange(num_graphs, dtype=jnp.int32), 8)

    a_hat = build_normalized_adjacency(edge_index, num_nodes)
    pool_mat = build_pool_matrix(batch, num_graphs, num_nodes)

    params = init_params(key, num_node_features, n_layers_conv, n_layers_out,
                         nout, nhid, graph_hidden_channels)

    out = gcn_encoder_forward(params, x, a_hat, pool_mat)
    out = jax.block_until_ready(out)

    assert out.shape == (num_graphs, nout), out.shape
    assert jnp.all(jnp.isfinite(out))

    # Sanity check vs pure-JAX f32 reference (loose tolerance: bf16 operands).
    ref = reference_forward(params, x, a_hat, pool_mat)
    assert jnp.allclose(out, ref, atol=1e-1, rtol=1e-1), (
        float(jnp.max(jnp.abs(out - ref))))

    print("KERNEL_OK")
</pallas_src>

<mosaic_0001>
module attributes {stable_mosaic.version = 11 : i64} {
  func.func @_fused_gcn_encoder_kernel(%arg0: memref<128x128xbf16, #tpu.memory_space<vmem>>, %arg1: memref<128x128xbf16, #tpu.memory_space<vmem>>, %arg2: memref<8x128xbf16, #tpu.memory_space<vmem>>, %arg3: memref<128x128xbf16, #tpu.memory_space<vmem>>, %arg4: memref<1x128xf32, #tpu.memory_space<vmem>>, %arg5: memref<128x128xbf16, #tpu.memory_space<vmem>>, %arg6: memref<1x128xf32, #tpu.memory_space<vmem>>, %arg7: memref<128x128xbf16, #tpu.memory_space<vmem>>, %arg8: memref<1x128xf32, #tpu.memory_space<vmem>>, %arg9: memref<128x128xbf16, #tpu.memory_space<vmem>>, %arg10: memref<1x128xf32, #tpu.memory_space<vmem>>, %arg11: memref<8x128xf32, #tpu.memory_space<vmem>>) attributes {dimension_semantics = [], scalar_prefetch = 0 : i64, scratch_operands = 0 : i64, tpu.core_type = #tpu.core_type<tc>} {
    %c0 = arith.constant 0 : index
    %c0_0 = arith.constant 0 : index
    %0 = vector.load %arg0[%c0, %c0_0] : memref<128x128xbf16, #tpu.memory_space<vmem>>, vector<128x128xbf16>
    %c0_1 = arith.constant 0 : index
    %c0_2 = arith.constant 0 : index
    %1 = vector.load %arg1[%c0_1, %c0_2] : memref<128x128xbf16, #tpu.memory_space<vmem>>, vector<128x128xbf16>
    %c0_3 = arith.constant 0 : index
    %c0_4 = arith.constant 0 : index
    %2 = vector.load %arg3[%c0_3, %c0_4] : memref<128x128xbf16, #tpu.memory_space<vmem>>, vector<128x128xbf16>
    %cst = arith.constant dense<0.000000e+00> : vector<128x128xf32>
    %3 = tpu.matmul %1, %2, %cst {dimension_numbers = #tpu.dot_dimension_numbers<[1], [0], [0], [1], [0, 0, 1, 1], [], []>} : vector<128x128xbf16>, vector<128x128xbf16>, vector<128x128xf32> -> vector<128x128xf32>
    %4 = arith.truncf %3 : vector<128x128xf32> to vector<128x128xbf16>
    %cst_5 = arith.constant dense<0.000000e+00> : vector<128x128xf32>
    %5 = tpu.matmul %0, %4, %cst_5 {dimension_numbers = #tpu.dot_dimension_numbers<[1], [0], [0], [1], [0, 0, 1, 1], [], []>} : vector<128x128xbf16>, vector<128x128xbf16>, vector<128x128xf32> -> vector<128x128xf32>
    %c0_6 = arith.constant 0 : index
    %c0_7 = arith.constant 0 : index
    %6 = vector.load %arg4[%c0_6, %c0_7] : memref<1x128xf32, #tpu.memory_space<vmem>>, vector<1x128xf32>
    %7 = vector.broadcast %6 : vector<1x128xf32> to vector<128x128xf32>
    %8 = arith.addf %5, %7 : vector<128x128xf32>
    %cst_8 = arith.constant 0.000000e+00 : f32
    %9 = vector.broadcast %cst_8 : f32 to vector<128x128xf32>
    %10 = arith.maximumf %8, %9 : vector<128x128xf32>
    %11 = arith.truncf %10 : vector<128x128xf32> to vector<128x128xbf16>
    %c0_9 = arith.constant 0 : index
    %c0_10 = arith.constant 0 : index
    %12 = vector.load %arg5[%c0_9, %c0_10] : memref<128x128xbf16, #tpu.memory_space<vmem>>, vector<128x128xbf16>
    %cst_11 = arith.constant dense<0.000000e+00> : vector<128x128xf32>
    %13 = tpu.matmul %11, %12, %cst_11 {dimension_numbers = #tpu.dot_dimension_numbers<[1], [0], [0], [1], [0, 0, 1, 1], [], []>} : vector<128x128xbf16>, vector<128x128xbf16>, vector<128x128xf32> -> vector<128x128xf32>
    %14 = arith.truncf %13 : vector<128x128xf32> to vector<128x128xbf16>
    %cst_12 = arith.constant dense<0.000000e+00> : vector<128x128xf32>
    %15 = tpu.matmul %0, %14, %cst_12 {dimension_numbers = #tpu.dot_dimension_numbers<[1], [0], [0], [1], [0, 0, 1, 1], [], []>} : vector<128x128xbf16>, vector<128x128xbf16>, vector<128x128xf32> -> vector<128x128xf32>
    %c0_13 = arith.constant 0 : index
    %c0_14 = arith.constant 0 : index
    %16 = vector.load %arg6[%c0_13, %c0_14] : memref<1x128xf32, #tpu.memory_space<vmem>>, vector<1x128xf32>
    %17 = vector.broadcast %16 : vector<1x128xf32> to vector<128x128xf32>
    %18 = arith.addf %15, %17 : vector<128x128xf32>
    %19 = arith.truncf %18 : vector<128x128xf32> to vector<128x128xbf16>
    %c0_15 = arith.constant 0 : index
    %c0_16 = arith.constant 0 : index
    %20 = vector.load %arg2[%c0_15, %c0_16] : memref<8x128xbf16, #tpu.memory_space<vmem>>, vector<8x128xbf16>
    %cst_17 = arith.constant dense<0.000000e+00> : vector<8x128xf32>
    %21 = tpu.matmul %20, %19, %cst_17 {dimension_numbers = #tpu.dot_dimension_numbers<[1], [0], [0], [1], [0, 0, 1, 1], [], []>} : vector<8x128xbf16>, vector<128x128xbf16>, vector<8x128xf32> -> vector<8x128xf32>
    %22 = arith.truncf %21 : vector<8x128xf32> to vector<8x128xbf16>
    %c0_18 = arith.constant 0 : index
    %c0_19 = arith.constant 0 : index
    %23 = vector.load %arg7[%c0_18, %c0_19] : memref<128x128xbf16, #tpu.memory_space<vmem>>, vector<128x128xbf16>
    %cst_20 = arith.constant dense<0.000000e+00> : vector<8x128xf32>
    %24 = tpu.matmul %22, %23, %cst_20 {dimension_numbers = #tpu.dot_dimension_numbers<[1], [0], [0], [1], [0, 0, 1, 1], [], []>} : vector<8x128xbf16>, vector<128x128xbf16>, vector<8x128xf32> -> vector<8x128xf32>
    %c0_21 = arith.constant 0 : index
    %c0_22 = arith.constant 0 : index
    %25 = vector.load %arg8[%c0_21, %c0_22] : memref<1x128xf32, #tpu.memory_space<vmem>>, vector<1x128xf32>
    %26 = vector.broadcast %25 : vector<1x128xf32> to vector<8x128xf32>
    %27 = arith.addf %24, %26 : vector<8x128xf32>
    %cst_23 = arith.constant 0.000000e+00 : f32
    %28 = vector.broadcast %cst_23 : f32 to vector<8x128xf32>
    %29 = arith.maximumf %27, %28 : vector<8x128xf32>
    %30 = arith.truncf %29 : vector<8x128xf32> to vector<8x128xbf16>
    %c0_24 = arith.constant 0 : index
    %c0_25 = arith.constant 0 : index
    %31 = vector.load %arg9[%c0_24, %c0_25] : memref<128x128xbf16, #tpu.memory_space<vmem>>, vector<128x128xbf16>
    %cst_26 = arith.constant dense<0.000000e+00> : vector<8x128xf32>
    %32 = tpu.matmul %30, %31, %cst_26 {dimension_numbers = #tpu.dot_dimension_numbers<[1], [0], [0], [1], [0, 0, 1, 1], [], []>} : vector<8x128xbf16>, vector<128x128xbf16>, vector<8x128xf32> -> vector<8x128xf32>
    %c0_27 = arith.constant 0 : index
    %c0_28 = arith.constant 0 : index
    %33 = vector.load %arg10[%c0_27, %c0_28] : memref<1x128xf32, #tpu.memory_space<vmem>>, vector<1x128xf32>
    %34 = vector.broadcast %33 : vector<1x128xf32> to vector<8x128xf32>
    %35 = arith.addf %32, %34 : vector<8x128xf32>
    %c0_29 = arith.constant 0 : index
    %c0_30 = arith.constant 0 : index
    %36 = vector.load %arg11[%c0_29, %c0_30] : memref<8x128xf32, #tpu.memory_space<vmem>>, vector<8x128xf32>
    tpu.vector_store %arg11[%c0_29, %c0_30], %35 {strides = array<i32>} : memref<8x128xf32, #tpu.memory_space<vmem>>, vector<8x128xf32>,
    return
  }
}

</mosaic_0001>

<bundles_post_ra>
// kernel: tpu_custom_call.1
= control target key start
LH: loop header
LB: loop body
LE: loop exit
PB: predicated region body
PF: predicated region fallthrough
CT: control target
= control target key end

     0   :  { %16 = vsyncpa [#allocation3], 0  ;;  %s1938_s0 = inlined_call_operand.hbm [shape: bf16[128,128], index: 0, kind: input, shape index: {}]   ;;  %s1939_s1 = inlined_call_operand.hbm [shape: bf16[128,128], index: 1, kind: input, shape index: {}]   ;;  %s1940_s2 = inlined_call_operand.vmem [shape: bf16[8,128], index: 2, kind: input, shape index: {}]   ;;  %s1941_s3 = inlined_call_operand.hbm [shape: bf16[128,128], index: 3, kind: input, shape index: {}]   ;;  %s1942_s4 = inlined_call_operand.vmem [shape: f32[1,128], index: 4, kind: input, shape index: {}]   ;;  %s1943_s5 = inlined_call_operand.hbm [shape: bf16[128,128], index: 5, kind: input, shape index: {}]   ;;  %s1944_s6 = inlined_call_operand.vmem [shape: f32[1,128], index: 6, kind: input, shape index: {}]   ;;  %s1945_s7 = inlined_call_operand.hbm [shape: bf16[128,128], index: 7, kind: input, shape index: {}]   ;;  %s1946_s8 = inlined_call_operand.vmem [shape: f32[1,128], index: 8, kind: input, shape index: {}]   ;;  %s1947_s9 = inlined_call_operand.hbm [shape: bf16[128,128], index: 9, kind: input, shape index: {}]   ;;  %s1948_s10 = inlined_call_operand.vmem [shape: f32[1,128], index: 10, kind: input, shape index: {}]   ;;  %s1949_s11 = inlined_call_operand.hbm [shape: f32[8,128], index: 11, kind: output, shape index: {}]  }
   0x1   :  { %17 = vsyncpa [#allocation6], 0 }
   0x2   :  { %18 = vsyncpa [#allocation9], 0 }
   0x3   :  { %19 = vsyncpa [#allocation12], 0 }
   0x4   :  { %20 = vsyncpa [#allocation4], 0  ;;  %s1667_s17 = smov [#allocation5]   ;;  %s1668_s19 = smov [#allocation8]  }
   0x5   :  { %s38_s18 = sshll.u32 %s1667_s17, 4  ;;  %s66_s20 = sshll.u32 %s1668_s19, 4  ;;  %s39_s18 = int_to_ptr.vmem [resolvable:$true] %s38_s18  ;;  %s1738_s20 = int_to_ptr.vmem [resolvable:$true] %s66_s20 }
   0x6   :  { %s1503_s23 = scalar_lea.hbm %s1939_s1, 1024 }
   0x7   :  { %p1504_p0 = scmp.ne.s32.totalorder %s1939_s1, %s1503_s23  ;;  %p1507_p1 = scmp.lt.u32.totalorder %s1503_s23, %s1939_s1 }
   0x9   :  { %p1509_p2 = pnand %p1507_p1, %p1504_p0 }
   0xb   :  { %1512 = shalt.err (!%p1509_p2)
}
   0xc   :  { %s1513_s28 = scalar_lea.vmem %s39_s18, 1024  ;;  %p1518_p4 = scmp.lt.s32.totalorder %s39_s18, %s39_s18 }
   0xd   :  { %p1514_p3 = scmp.ne.s32.totalorder %s39_s18, %s1513_s28  ;;  %p1519_p5 = scmp.lt.s32.totalorder %s1513_s28, %s1513_s28 }
   0xf   :  { %p1520_p6 = por %p1519_p5, %p1518_p4 }
  0x11   :  { %p1521_p7 = pnand %p1520_p6, %p1514_p3 }
  0x13   :  { %1524 = shalt.err (!%p1521_p7)
}
  0x14   :  { %s1669_s29 = smov 64   ;;  %s1670_s30 = smov 4  }
  0x15   :  { %44 = dma.hbm_to_vmem [thread:$0]  %s1939_s1, 1024, %s39_s18, [#allocation6], %s1669_s29, %s1669_s29, %s1670_s30  }
  0x16   :  { %s1525_s16 = scalar_lea.hbm %s1943_s5, 1024 }
  0x17   :  { %p1526_p8 = scmp.ne.s32.totalorder %s1943_s5, %s1525_s16  ;;  %p1529_p9 = scmp.lt.u32.totalorder %s1525_s16, %s1943_s5 }
  0x19   :  { %p1531_p10 = pnand %p1529_p9, %p1526_p8 }
  0x1b   :  { %1534 = shalt.err (!%p1531_p10)
}
  0x1c   :  { %s1535_s23 = scalar_lea.vmem %s1738_s20, 1024  ;;  %p1540_p12 = scmp.lt.s32.totalorder %s1738_s20, %s1738_s20 }
  0x1d   :  { %p1536_p11 = scmp.ne.s32.totalorder %s1738_s20, %s1535_s23  ;;  %p1541_p13 = scmp.lt.s32.totalorder %s1535_s23, %s1535_s23 }
  0x1f   :  { %p1542_p0 = por %p1541_p13, %p1540_p12 }
  0x21   :  { %p1543_p1 = pnand %p1542_p0, %p1536_p11 }
  0x23   :  { %1546 = shalt.err (!%p1543_p1)
}
  0x24   :  { %72 = dma.hbm_to_vmem [thread:$0]  %s1943_s5, 1024, %s1738_s20, [#allocation9], %s1669_s29, %s1669_s29, %s1670_s30  }
  0x25   :  { %s1671_s24 = smov [#allocation2]   ;;  %s1672_s26 = smov [#allocation7]  }
  0x26   :  { %s26_s25 = sshll.u32 %s1671_s24, 4  ;;  %s52_s27 = sshll.u32 %s1672_s26, 4  ;;  %s27_s25 = int_to_ptr.vmem [resolvable:$true] %s26_s25  ;;  %s1775_s27 = int_to_ptr.vmem [resolvable:$true] %s52_s27 }
  0x27   :  { %s1547_s13 = scalar_lea.hbm %s1938_s0, 1024 }
  0x28   :  { %p1548_p2 = scmp.ne.s32.totalorder %s1938_s0, %s1547_s13  ;;  %p1551_p3 = scmp.lt.u32.totalorder %s1547_s13, %s1938_s0 }
  0x2a   :  { %p1553_p4 = pnand %p1551_p3, %p1548_p2 }
  0x2c   :  { %1556 = shalt.err (!%p1553_p4)
}
  0x2d   :  { %s1557_s5 = scalar_lea.vmem %s27_s25, 1024  ;;  %p1562_p6 = scmp.lt.s32.totalorder %s27_s25, %s27_s25 }
  0x2e   :  { %p1558_p5 = scmp.ne.s32.totalorder %s27_s25, %s1557_s5  ;;  %p1563_p7 = scmp.lt.s32.totalorder %s1557_s5, %s1557_s5 }
  0x30   :  { %p1564_p8 = por %p1563_p7, %p1562_p6 }
  0x32   :  { %p1565_p9 = pnand %p1564_p8, %p1558_p5 }
  0x34   :  { %1568 = shalt.err (!%p1565_p9)
}
  0x35   :  { %32 = dma.hbm_to_vmem [thread:$0]  %s1938_s0, 1024, %s27_s25, [#allocation3], %s1669_s29, %s1669_s29, %s1670_s30  }
  0x36   :  { %s1569_s23 = scalar_lea.hbm %s1941_s3, 1024 }
  0x37   :  { %p1570_p10 = scmp.ne.s32.totalorder %s1941_s3, %s1569_s23  ;;  %p1573_p11 = scmp.lt.u32.totalorder %s1569_s23, %s1941_s3 }
  0x39   :  { %p1575_p12 = pnand %p1573_p11, %p1570_p10 }
  0x3b   :  { %1578 = shalt.err (!%p1575_p12)
}
  0x3c   :  { %s1579_s28 = scalar_lea.vmem %s1775_s27, 1024  ;;  %p1584_p0 = scmp.lt.s32.totalorder %s1775_s27, %s1775_s27 }
  0x3d   :  { %p1580_p13 = scmp.ne.s32.totalorder %s1775_s27, %s1579_s28  ;;  %p1585_p1 = scmp.lt.s32.totalorder %s1579_s28, %s1579_s28 }
  0x3f   :  { %p1586_p2 = por %p1585_p1, %p1584_p0 }
  0x41   :  { %p1587_p3 = pnand %p1586_p2, %p1580_p13 }
  0x43   :  { %1590 = shalt.err (!%p1587_p3)
}
  0x44   :  { %58 = dma.hbm_to_vmem [thread:$0]  %s1941_s3, 1024, %s1775_s27, [#allocation6], %s1669_s29, %s1669_s29, %s1670_s30  }
  0x45   :  { %s1673_s12 = smov [#allocation10]   ;;  %s1674_s14 = smov [#allocation11]  }
  0x46   :  { %s80_s13 = sshll.u32 %s1673_s12, 4  ;;  %s94_s15 = sshll.u32 %s1674_s14, 4  ;;  %s81_s13 = int_to_ptr.vmem [resolvable:$true] %s80_s13  ;;  %s1812_s15 = int_to_ptr.vmem [resolvable:$true] %s94_s15 }
  0x47   :  { %s1591_s5 = scalar_lea.hbm %s1945_s7, 1024 }
  0x48   :  { %p1592_p4 = scmp.ne.s32.totalorder %s1945_s7, %s1591_s5  ;;  %p1595_p5 = scmp.lt.u32.totalorder %s1591_s5, %s1945_s7 }
  0x4a   :  { %p1597_p6 = pnand %p1595_p5, %p1592_p4 }
  0x4c   :  { %1600 = shalt.err (!%p1597_p6)
}
  0x4d   :  { %s1601_s3 = scalar_lea.vmem %s81_s13, 1024  ;;  %p1606_p8 = scmp.lt.s32.totalorder %s81_s13, %s81_s13 }
  0x4e   :  { %p1602_p7 = scmp.ne.s32.totalorder %s81_s13, %s1601_s3  ;;  %p1607_p9 = scmp.lt.s32.totalorder %s1601_s3, %s1601_s3 }
  0x50   :  { %p1608_p10 = por %p1607_p9, %p1606_p8 }
  0x52   :  { %p1609_p11 = pnand %p1608_p10, %p1602_p7 }
  0x54   :  { %1612 = shalt.err (!%p1609_p11)
}
  0x55   :  { %86 = dma.hbm_to_vmem [thread:$0]  %s1945_s7, 1024, %s81_s13, [#allocation9], %s1669_s29, %s1669_s29, %s1670_s30  }
  0x56   :  { %s1613_s24 = scalar_lea.hbm %s1947_s9, 1024 }
  0x57   :  { %p1614_p12 = scmp.ne.s32.totalorder %s1947_s9, %s1613_s24  ;;  %p1617_p13 = scmp.lt.u32.totalorder %s1613_s24, %s1947_s9 }
  0x59   :  { %p1619_p0 = pnand %p1617_p13, %p1614_p12 }
  0x5b   :  { %1622 = shalt.err (!%p1619_p0)
}
  0x5c   :  { %s1623_s12 = scalar_lea.vmem %s1812_s15, 1024  ;;  %p1628_p2 = scmp.lt.s32.totalorder %s1812_s15, %s1812_s15 }
  0x5d   :  { %p1624_p1 = scmp.ne.s32.totalorder %s1812_s15, %s1623_s12  ;;  %p1629_p3 = scmp.lt.s32.totalorder %s1623_s12, %s1623_s12 }
  0x5f   :  { %p1630_p4 = por %p1629_p3, %p1628_p2 }
  0x61   :  { %p1631_p5 = pnand %p1630_p4, %p1624_p1 }
  0x63   :  { %1634 = shalt.err (!%p1631_p5)
}
  0x64   :  { %100 = dma.hbm_to_vmem [thread:$0]  %s1947_s9, 1024, %s1812_s15, [#allocation12], %s1669_s29, %s1669_s29, %s1670_s30  }
  0x65   :  { %1657 = dma.done.wait [#allocation3], 1024  }
  0x66   :  { %1658 = vsyncadd [#allocation3], 4294966272 }
  0x67   :  { %1659 = dma.done.wait [#allocation6], 2048  }
  0x68   :  { %1660 = vsyncadd [#allocation6], 4294965248 }
  0x69   :  { %1661 = dma.done.wait [#allocation9], 2048  }
  0x6a   :  { %1662 = vsyncadd [#allocation9], 4294965248 }
  0x6b   :  { %1663 = dma.done.wait [#allocation12], 1024  }
  0x6c   :  { %1664 = vsyncadd [#allocation12], 4294966272  ;;  %v1455_v0 = vld [vmem:[#allocation7] sm:$0xff]   ;;  %v1456_v1 = vld [vmem:[#allocation7 + $0x8] sm:$0xff]   ;;  %vm1676_vm0 = vmmov 0   ;;  %s1677_s5 = smov [#allocation13]  }
  0x6d   :  { %1256 = vmatprep.subr.bf16.mxu0 %v1455_v0  ;;  %v1457_v2 = vld [vmem:[#allocation7 + $0x10] sm:$0xff]   ;;  %v1458_v3 = vld [vmem:[#allocation7 + $0x18] sm:$0xff]   ;;  %v1463_v4 = vld [vmem:[#allocation5] sm:$0xff]   ;;  %s1101_s20 = sshll.u32 %s1677_s5, 4  ;;  %s1102_s20 = int_to_ptr.vmem [resolvable:$true] %s1101_s20 }
  0x6e   :  { %1257 = vmatpush3.bf16.msra.mxu0 %v1455_v0  ;;  %1272 = vmatprep.mubr.bf16.mxu0 %v1463_v4  ;;  %v1459_v5 = vld [vmem:[#allocation7 + $0x20] sm:$0xff]   ;;  %v1460_v6 = vld [vmem:[#allocation7 + $0x28] sm:$0xff]   ;;  %v1461_v7 = vld [vmem:[#allocation7 + $0x30] sm:$0xff]   ;;  %p1640_p7 = scmp.lt.s32.totalorder %s1102_s20, %s1102_s20 }
  0x6f   :  { %1258 = vmatprep.subr.bf16.mxu0 %v1456_v1  ;;  %v1462_v8 = vld [vmem:[#allocation7 + $0x38] sm:$0xff]   ;;  %v1464_v9 = vld [vmem:[#allocation5 + $0x8] sm:$0xff]   ;;  %v1465_v10 = vld [vmem:[#allocation5 + $0x10] sm:$0xff]  }
  0x70   :  { %v1466_v11 = vld [vmem:[#allocation5 + $0x18] sm:$0xff]   ;;  %v1467_v12 = vld [vmem:[#allocation5 + $0x20] sm:$0xff]   ;;  %v1468_v13 = vld [vmem:[#allocation5 + $0x28] sm:$0xff]  }
  0x71   :  { %v1469_v14 = vld [vmem:[#allocation5 + $0x30] sm:$0xff]   ;;  %v1470_v15 = vld [vmem:[#allocation5 + $0x38] sm:$0xff]   ;;  %v1849_v16 = vld [vmem:[#allocation2] sm:$0xff]  }
  0x72   :  { %1259 = vmatpush3.bf16.msra.mxu0 %v1456_v1  ;;  %1304 = vmatprep.mubr.bf16.mxu1 %v1849_v16  ;;  %v1479_v17 = vld [vmem:[#allocation8] sm:$0xff]   ;;  %v1480_v18 = vld [vmem:[#allocation8 + $0x8] sm:$0xff]   ;;  %v1481_v19 = vld [vmem:[#allocation8 + $0x10] sm:$0xff]  }
  0x73   :  { %1260 = vmatprep.subr.bf16.mxu0 %v1457_v2  ;;  %v1482_v20 = vld [vmem:[#allocation8 + $0x18] sm:$0xff]   ;;  %v1483_v21 = vld [vmem:[#allocation8 + $0x20] sm:$0xff]   ;;  %v1484_v22 = vld [vmem:[#allocation8 + $0x28] sm:$0xff]  }
  0x74   :  { %v1852_v47 = vld [vmem:[#allocation2 + $0x8] sm:$0xff]   ;;  %v1854_v48 = vld [vmem:[#allocation2 + $0x10] sm:$0xff]   ;;  %v1858_v49 = vld [vmem:[#allocation2 + $0x18] sm:$0xff]  }
  0x75   :  { %v1860_v50 = vld [vmem:[#allocation2 + $0x20] sm:$0xff]   ;;  %v1864_v51 = vld [vmem:[#allocation2 + $0x28] sm:$0xff]   ;;  %v1866_v52 = vld [vmem:[#allocation2 + $0x30] sm:$0xff]  }
  0x76   :  { %1261 = vmatpush3.bf16.msra.mxu0 %v1457_v2  ;;  %v1870_v53 = vld [vmem:[#allocation2 + $0x38] sm:$0xff]   ;;  %v1485_v54 = vld [vmem:[#allocation8 + $0x30] sm:$0xff]   ;;  %v1129_v56 = vld [vmem:[%s1942_s4] ss:$0 sm:$0xff] }
  0x77   :  { %1262 = vmatprep.subr.bf16.mxu0 %v1458_v3  ;;  %v1486_v55 = vld [vmem:[#allocation8 + $0x38] sm:$0xff]  }
  0x7a   :  { %1263 = vmatpush3.bf16.msra.mxu0 %v1458_v3 }
  0x7b   :  { %1264 = vmatprep.subr.bf16.mxu0 %v1459_v5 }
  0x7e   :  { %1265 = vmatpush3.bf16.msra.mxu0 %v1459_v5 }
  0x7f   :  { %1266 = vmatprep.subr.bf16.mxu0 %v1460_v6 }
  0x82   :  { %1267 = vmatpush3.bf16.msra.mxu0 %v1460_v6 }
  0x83   :  { %1268 = vmatprep.subr.bf16.mxu0 %v1461_v7 }
  0x86   :  { %1269 = vmatpush3.bf16.msra.mxu0 %v1461_v7 }
  0x87   :  { %1270 = vmatprep.subr.bf16.mxu0 %v1462_v8 }
  0x8a   :  { %1271 = vmatpush3.bf16.msra.mxu0 %v1462_v8 }
  0x8b   :  { %1320 = vmatprep.subr.bf16.mxu0 %v1479_v17 }
  0x8d   :  { %1273 = vmatmul.mubr.bf16.vlgmr.msra.gmra.mrb[0].mxu0 %v1464_v9 }
  0x8e   :  { %1276 = vmatprep.mubr.bf16.mxu0 %v1465_v10  ;;  %1321 = vmatpush3.bf16.msra.mxu0 %v1479_v17 }
  0x8f   :  { %1322 = vmatprep.subr.bf16.mxu0 %v1480_v18 }
  0x92   :  { %1323 = vmatpush3.bf16.msra.mxu0 %v1480_v18 }
  0x93   :  { %1324 = vmatprep.subr.bf16.mxu0 %v1481_v19 }
  0x95   :  { %1277 = vmatmul.mubr.bf16.gmra.mrb[4].mxu0 %v1466_v11 }
  0x96   :  { %1280 = vmatprep.mubr.bf16.mxu0 %v1467_v12  ;;  %1325 = vmatpush3.bf16.msra.mxu0 %v1481_v19 }
  0x97   :  { %1326 = vmatprep.subr.bf16.mxu0 %v1482_v20 }
  0x9a   :  { %1327 = vmatpush3.bf16.msra.mxu0 %v1482_v20 }
  0x9b   :  { %1328 = vmatprep.subr.bf16.mxu0 %v1483_v21 }
  0x9d   :  { %1281 = vmatmul.mubr.bf16.gmra.mrb[8].mxu0 %v1468_v13 }
  0x9e   :  { %1284 = vmatprep.mubr.bf16.mxu0 %v1469_v14  ;;  %1329 = vmatpush3.bf16.msra.mxu0 %v1483_v21 }
  0x9f   :  { %1330 = vmatprep.subr.bf16.mxu0 %v1484_v22 }
  0xa2   :  { %1331 = vmatpush3.bf16.msra.mxu0 %v1484_v22 }
  0xa3   :  { %1332 = vmatprep.subr.bf16.mxu0 %v1485_v54 }
  0xa5   :  { %1285 = vmatmul.mubr.bf16.gmra.mrb[12].mxu0 %v1470_v15 }
  0xa6   :  { %1333 = vmatpush3.bf16.msra.mxu0 %v1485_v54 }
  0xa7   :  { %1334 = vmatprep.subr.bf16.mxu0 %v1486_v55 }
  0xaa   :  { %1335 = vmatpush3.bf16.msra.mxu0 %v1486_v55 }
 0x160   :  { %v1274_v23 = vpop.f32.mrb[0].mxu0 }
 0x161   :  { %v300_v24 = vpop.f32.mrb[1].mxu0 }
 0x162   :  { %v1275_v25 = vpop.f32.mrb[2].mxu0 }
 0x163   :  { %v364_v26 = vpack.c.bf16 %v1275_v25, %v1274_v23  ;;  %v303_v27 = vpop.f32.mrb[3].mxu0 }
 0x164   :  { %v363_v28 = vpack.c.bf16 %v303_v27, %v300_v24 }
 0x166   :  { %1288 = vmatprep.subr.bf16.mxu1 %v363_v28 }
 0x167   :  { %1289 = vmatpush3.bf16.msra.mxu1 %v363_v28 }
 0x168   :  { %v1278_v29 = vpop.f32.mrb[4].mxu0  ;;  %1290 = vmatprep.subr.bf16.mxu1 %v364_v26 }
 0x169   :  { %v316_v30 = vpop.f32.mrb[5].mxu0 }
 0x16a   :  { %v1279_v31 = vpop.f32.mrb[6].mxu0 }
 0x16b   :  { %v366_v32 = vpack.c.bf16 %v1279_v31, %v1278_v29  ;;  %v319_v33 = vpop.f32.mrb[7].mxu0  ;;  %1291 = vmatpush3.bf16.msra.mxu1 %v364_v26 }
 0x16c   :  { %v365_v34 = vpack.c.bf16 %v319_v33, %v316_v30 }
 0x16e   :  { %1292 = vmatprep.subr.bf16.mxu1 %v365_v34 }
 0x16f   :  { %1293 = vmatpush3.bf16.msra.mxu1 %v365_v34 }
 0x170   :  { %v1282_v35 = vpop.f32.mrb[8].mxu0  ;;  %1294 = vmatprep.subr.bf16.mxu1 %v366_v32 }
 0x171   :  { %v332_v36 = vpop.f32.mrb[9].mxu0 }
 0x172   :  { %v1283_v37 = vpop.f32.mrb[10].mxu0 }
 0x173   :  { %v368_v38 = vpack.c.bf16 %v1283_v37, %v1282_v35  ;;  %v335_v39 = vpop.f32.mrb[11].mxu0  ;;  %1295 = vmatpush3.bf16.msra.mxu1 %v366_v32 }
 0x174   :  { %v367_v40 = vpack.c.bf16 %v335_v39, %v332_v36 }
 0x176   :  { %1296 = vmatprep.subr.bf16.mxu1 %v367_v40 }
 0x177   :  { %1297 = vmatpush3.bf16.msra.mxu1 %v367_v40 }
 0x178   :  { %v1286_v41 = vpop.f32.mrb[12].mxu0  ;;  %1298 = vmatprep.subr.bf16.mxu1 %v368_v38 }
 0x179   :  { %v348_v42 = vpop.f32.mrb[13].mxu0 }
 0x17a   :  { %v1287_v43 = vpop.f32.mrb[14].mxu0 }
 0x17b   :  { %v370_v44 = vpack.c.bf16 %v1287_v43, %v1286_v41  ;;  %v351_v45 = vpop.f32.mrb[15].mxu0  ;;  %1299 = vmatpush3.bf16.msra.mxu1 %v368_v38 }
 0x17c   :  { %v369_v46 = vpack.c.bf16 %v351_v45, %v348_v42 }
 0x17e   :  { %1300 = vmatprep.subr.bf16.mxu1 %v369_v46 }
 0x17f   :  { %1301 = vmatpush3.bf16.msra.mxu1 %v369_v46 }
 0x180   :  { %1302 = vmatprep.subr.bf16.mxu1 %v370_v44 }
 0x183   :  { %1303 = vmatpush3.bf16.msra.mxu1 %v370_v44 }
 0x186   :  { %1305 = vmatmul.mubr.bf16.vlgmr.msra.gmra.mrb[0].mxu1 %v1852_v47 }
 0x187   :  { %1308 = vmatprep.mubr.bf16.mxu1 %v1854_v48 }
 0x18e   :  { %1309 = vmatmul.mubr.bf16.gmra.mrb[4].mxu1 %v1858_v49 }
 0x18f   :  { %1312 = vmatprep.mubr.bf16.mxu1 %v1860_v50 }
 0x196   :  { %1313 = vmatmul.mubr.bf16.gmra.mrb[8].mxu1 %v1864_v51 }
 0x197   :  { %1316 = vmatprep.mubr.bf16.mxu1 %v1866_v52 }
 0x19e   :  { %1317 = vmatmul.mubr.bf16.gmra.mrb[12].mxu1 %v1870_v53 }
 0x19f   :  { %1368 = vmatprep.mubr.bf16.mxu1 %v1849_v16 }
 0x259   :  { %v1306_v57 = vpop.f32.mrb[0].mxu1 }
 0x25a   :  { %v469_v58 = vadd.f32 %v1306_v57, %v1129_v56  ;;  %v460_v59 = vpop.f32.mrb[1].mxu1 }
 0x25b   :  { %v461_v60 = vadd.f32 %v1129_v56, %v460_v59  ;;  %v1307_v61 = vpop.f32.mrb[2].mxu1 }
 0x25c   :  { %v472_v62 = vadd.f32 %v1307_v61, %v1129_v56  ;;  %v463_v63 = vpop.f32.mrb[3].mxu1  ;;  %v525_v1 = vmax.f32 %v469_v58, 0.0 }
 0x25d   :  { %v464_v0 = vadd.f32 %v1129_v56, %v463_v63  ;;  %v523_v3 = vmax.f32 %v461_v60, 0.0 }
 0x25e   :  { %v526_v2 = vmax.f32 %v472_v62, 0.0 }
 0x25f   :  { %v524_v4 = vmax.f32 %v464_v0, 0.0 }
 0x260   :  { %v540_v5 = vpack.c.bf16 %v526_v2, %v525_v1 }
 0x261   :  { %v539_v6 = vpack.c.bf16 %v524_v4, %v523_v3  ;;  %v1310_v7 = vpop.f32.mrb[4].mxu1 }
 0x262   :  { %v485_v8 = vadd.f32 %v1310_v7, %v1129_v56  ;;  %v476_v9 = vpop.f32.mrb[5].mxu1 }
 0x263   :  { %v477_v10 = vadd.f32 %v1129_v56, %v476_v9  ;;  %v1311_v11 = vpop.f32.mrb[6].mxu1  ;;  %1336 = vmatprep.mubr.bf16.mxu0 %v539_v6 }
 0x264   :  { %v488_v12 = vadd.f32 %v1311_v11, %v1129_v56  ;;  %v479_v13 = vpop.f32.mrb[7].mxu1  ;;  %1337 = vmatmul.mubr.bf16.vlgmr.msra.gmra.mrb[16].mxu0 %v540_v5  ;;  %v529_v15 = vmax.f32 %v485_v8, 0.0 }
 0x265   :  { %v480_v14 = vadd.f32 %v1129_v56, %v479_v13  ;;  %v527_v17 = vmax.f32 %v477_v10, 0.0 }
 0x266   :  { %v530_v16 = vmax.f32 %v488_v12, 0.0 }
 0x267   :  { %v528_v18 = vmax.f32 %v480_v14, 0.0 }
 0x268   :  { %v542_v19 = vpack.c.bf16 %v530_v16, %v529_v15  ;;  %v1675_v16 = vmov 0.0  }
 0x269   :  { %v541_v20 = vpack.c.bf16 %v528_v18, %v527_v17  ;;  %v1314_v21 = vpop.f32.mrb[8].mxu1  ;;  %1384 = vmatprep.subr.bf16.mxu0 %v1675_v16  ;;  %v1146_v18 = vld [vmem:[%s1944_s6] ss:$0 sm:$0xff] }
 0x26a   :  { %v501_v22 = vadd.f32 %v1314_v21, %v1129_v56  ;;  %v492_v23 = vpop.f32.mrb[9].mxu1 }
 0x26b   :  { %v493_v24 = vadd.f32 %v1129_v56, %v492_v23  ;;  %v1315_v25 = vpop.f32.mrb[10].mxu1  ;;  %1340 = vmatprep.mubr.bf16.mxu0 %v541_v20 }
 0x26c   :  { %v504_v26 = vadd.f32 %v1315_v25, %v1129_v56  ;;  %v495_v27 = vpop.f32.mrb[11].mxu1  ;;  %1341 = vmatmul.mubr.bf16.gmra.mrb[20].mxu0 %v542_v19  ;;  %v533_v29 = vmax.f32 %v501_v22, 0.0 }
 0x26d   :  { %v496_v28 = vadd.f32 %v1129_v56, %v495_v27  ;;  %v531_v31 = vmax.f32 %v493_v24, 0.0 }
 0x26e   :  { %v534_v30 = vmax.f32 %v504_v26, 0.0 }
 0x26f   :  { %v532_v32 = vmax.f32 %v496_v28, 0.0 }
 0x270   :  { %v544_v33 = vpack.c.bf16 %v534_v30, %v533_v29 }
 0x271   :  { %v543_v34 = vpack.c.bf16 %v532_v32, %v531_v31  ;;  %v1318_v35 = vpop.f32.mrb[12].mxu1 }
 0x272   :  { %v517_v36 = vadd.f32 %v1318_v35, %v1129_v56  ;;  %v508_v37 = vpop.f32.mrb[13].mxu1 }
 0x273   :  { %v509_v38 = vadd.f32 %v1129_v56, %v508_v37  ;;  %v1319_v39 = vpop.f32.mrb[14].mxu1  ;;  %1344 = vmatprep.mubr.bf16.mxu0 %v543_v34 }
 0x274   :  { %v520_v40 = vadd.f32 %v1319_v39, %v1129_v56  ;;  %v511_v41 = vpop.f32.mrb[15].mxu1  ;;  %1345 = vmatmul.mubr.bf16.gmra.mrb[24].mxu0 %v544_v33  ;;  %v537_v43 = vmax.f32 %v517_v36, 0.0 }
 0x275   :  { %v512_v42 = vadd.f32 %v1129_v56, %v511_v41  ;;  %v535_v45 = vmax.f32 %v509_v38, 0.0 }
 0x276   :  { %v538_v44 = vmax.f32 %v520_v40, 0.0 }
 0x277   :  { %v536_v46 = vmax.f32 %v512_v42, 0.0 }
 0x278   :  { %v546_v54 = vpack.c.bf16 %v538_v44, %v537_v43 }
 0x279   :  { %v545_v55 = vpack.c.bf16 %v536_v46, %v535_v45 }
 0x27b   :  { %1348 = vmatprep.mubr.bf16.mxu0 %v545_v55 }
 0x27c   :  { %1349 = vmatmul.mubr.bf16.gmra.mrb[28].mxu0 %v546_v54 }
 0x27d   :  { %1400 = vmatprep.mubr.msk.bf16.mxu0 %vm1676_vm0, %v1675_v16 }
 0x337   :  { %v1338_v57 = vpop.f32.mrb[16].mxu0 }
 0x338   :  { %v645_v58 = vpop.f32.mrb[17].mxu0 }
 0x339   :  { %v1339_v59 = vpop.f32.mrb[18].mxu0 }
 0x33a   :  { %v709_v60 = vpack.c.bf16 %v1339_v59, %v1338_v57  ;;  %v648_v61 = vpop.f32.mrb[19].mxu0 }
 0x33b   :  { %v708_v62 = vpack.c.bf16 %v648_v61, %v645_v58 }
 0x33d   :  { %1352 = vmatprep.subr.bf16.mxu1 %v708_v62 }
 0x33e   :  { %1353 = vmatpush3.bf16.msra.mxu1 %v708_v62 }
 0x33f   :  { %v1342_v63 = vpop.f32.mrb[20].mxu0  ;;  %1354 = vmatprep.subr.bf16.mxu1 %v709_v60 }
 0x340   :  { %v661_v0 = vpop.f32.mrb[21].mxu0 }
 0x341   :  { %v1343_v56 = vpop.f32.mrb[22].mxu0 }
 0x342   :  { %v711_v1 = vpack.c.bf16 %v1343_v56, %v1342_v63  ;;  %v664_v2 = vpop.f32.mrb[23].mxu0  ;;  %1355 = vmatpush3.bf16.msra.mxu1 %v709_v60 }
 0x343   :  { %v710_v3 = vpack.c.bf16 %v664_v2, %v661_v0  ;;  %v1494_v2 = vld [vmem:[#allocation10 + $0x38] sm:$0xff]  }
 0x345   :  { %1356 = vmatprep.subr.bf16.mxu1 %v710_v3 }
 0x346   :  { %1357 = vmatpush3.bf16.msra.mxu1 %v710_v3  ;;  %v1495_v3 = vld [vmem:[#allocation11] sm:$0xff]  }
 0x347   :  { %v1346_v4 = vpop.f32.mrb[24].mxu0  ;;  %1358 = vmatprep.subr.bf16.mxu1 %v711_v1 }
 0x348   :  { %v677_v5 = vpop.f32.mrb[25].mxu0 }
 0x349   :  { %v1347_v6 = vpop.f32.mrb[26].mxu0 }
 0x34a   :  { %v713_v7 = vpack.c.bf16 %v1347_v6, %v1346_v4  ;;  %v680_v8 = vpop.f32.mrb[27].mxu0  ;;  %1359 = vmatpush3.bf16.msra.mxu1 %v711_v1  ;;  %v828_v1 = vld [vmem:[%s1940_s2] sm:$0xf]  ;;  %v1496_v4 = vld [vmem:[#allocation11 + $0x8] sm:$0xff]   ;;  %v1498_v6 = vld [vmem:[#allocation11 + $0x18] sm:$0xff]  }
 0x34b   :  { %v712_v9 = vpack.c.bf16 %v680_v8, %v677_v5  ;;  %v1497_v5 = vld [vmem:[#allocation11 + $0x10] sm:$0xff]   ;;  %v1500_v8 = vld [vmem:[#allocation11 + $0x28] sm:$0xff]  }
 0x34d   :  { %1360 = vmatprep.subr.bf16.mxu1 %v712_v9 }
 0x34e   :  { %1361 = vmatpush3.bf16.msra.mxu1 %v712_v9 }
 0x34f   :  { %v1350_v10 = vpop.f32.mrb[28].mxu0  ;;  %1362 = vmatprep.subr.bf16.mxu1 %v713_v7 }
 0x350   :  { %v693_v11 = vpop.f32.mrb[29].mxu0 }
 0x351   :  { %v1351_v12 = vpop.f32.mrb[30].mxu0 }
 0x352   :  { %v715_v13 = vpack.c.bf16 %v1351_v12, %v1350_v10  ;;  %v696_v14 = vpop.f32.mrb[31].mxu0  ;;  %1363 = vmatpush3.bf16.msra.mxu1 %v713_v7  ;;  %v1499_v7 = vld [vmem:[#allocation11 + $0x20] sm:$0xff]  }
 0x353   :  { %v714_v15 = vpack.c.bf16 %v696_v14, %v693_v11  ;;  %v1501_v14 = vld [vmem:[#allocation11 + $0x30] sm:$0xff]  }
 0x355   :  { %1364 = vmatprep.subr.bf16.mxu1 %v714_v15 }
 0x356   :  { %1365 = vmatpush3.bf16.msra.mxu1 %v714_v15  ;;  %v1502_v15 = vld [vmem:[#allocation11 + $0x38] sm:$0xff]  }
 0x357   :  { %1366 = vmatprep.subr.bf16.mxu1 %v715_v13 }
 0x35a   :  { %1367 = vmatpush3.bf16.msra.mxu1 %v715_v13 }
 0x35b   :  { %1404 = vmatprep.subr.bf16.mxu1 %v1675_v16 }
 0x35d   :  { %1369 = vmatmul.mubr.bf16.vlgmr.msra.gmra.mrb[16].mxu1 %v1852_v47  ;;  %v1487_v47 = vld [vmem:[#allocation10] sm:$0xff]  }
 0x35e   :  { %1372 = vmatprep.mubr.bf16.mxu1 %v1854_v48  ;;  %1405 = vmatpush3.bf16.msra.mxu1 %v1487_v47  ;;  %v1488_v48 = vld [vmem:[#allocation10 + $0x8] sm:$0xff]   ;;  %v1147_v47 = vld [vmem:[%s1946_s8] ss:$0 sm:$0xff]  ;;  %s1635_s8 = scalar_lea.vmem %s1102_s20, 128 }
 0x35f   :  { %1406 = vmatprep.subr.bf16.mxu1 %v1675_v16  ;;  %p1636_p6 = scmp.ne.s32.totalorder %s1102_s20, %s1635_s8  ;;  %p1641_p8 = scmp.lt.s32.totalorder %s1635_s8, %s1635_s8 }
 0x361   :  { %p1642_p9 = por %p1641_p8, %p1640_p7 }
 0x362   :  { %1407 = vmatpush3.bf16.msra.mxu1 %v1488_v48 }
 0x363   :  { %1408 = vmatprep.subr.bf16.mxu1 %v1675_v16  ;;  %p1643_p10 = pnand %p1642_p9, %p1636_p6 }
 0x365   :  { %1373 = vmatmul.mubr.bf16.gmra.mrb[20].mxu1 %v1858_v49  ;;  %v1489_v49 = vld [vmem:[#allocation10 + $0x10] sm:$0xff]  }
 0x366   :  { %1376 = vmatprep.mubr.bf16.mxu1 %v1860_v50  ;;  %1409 = vmatpush3.bf16.msra.mxu1 %v1489_v49  ;;  %v1490_v50 = vld [vmem:[#allocation10 + $0x18] sm:$0xff]  }
 0x367   :  { %1410 = vmatprep.subr.bf16.mxu1 %v1675_v16 }
 0x36a   :  { %1411 = vmatpush3.bf16.msra.mxu1 %v1490_v50 }
 0x36b   :  { %1412 = vmatprep.subr.bf16.mxu1 %v1675_v16 }
 0x36d   :  { %1377 = vmatmul.mubr.bf16.gmra.mrb[24].mxu1 %v1864_v51  ;;  %v1491_v51 = vld [vmem:[#allocation10 + $0x20] sm:$0xff]  }
 0x36e   :  { %1380 = vmatprep.mubr.bf16.mxu1 %v1866_v52  ;;  %1413 = vmatpush3.bf16.msra.mxu1 %v1491_v51  ;;  %v1492_v52 = vld [vmem:[#allocation10 + $0x28] sm:$0xff]  }
 0x36f   :  { %1414 = vmatprep.subr.bf16.mxu1 %v1675_v16 }
 0x372   :  { %1415 = vmatpush3.bf16.msra.mxu1 %v1492_v52 }
 0x373   :  { %1416 = vmatprep.subr.bf16.mxu1 %v1675_v16 }
 0x375   :  { %1381 = vmatmul.mubr.bf16.gmra.mrb[28].mxu1 %v1870_v53  ;;  %v1493_v53 = vld [vmem:[#allocation10 + $0x30] sm:$0xff]  }
 0x376   :  { %1420 = vmatprep.mubr.msk.bf16.mxu1 %vm1676_vm0, %v1675_v16  ;;  %1417 = vmatpush3.bf16.msra.mxu1 %v1493_v53 }
 0x377   :  { %1418 = vmatprep.subr.bf16.mxu1 %v1675_v16 }
 0x37a   :  { %1419 = vmatpush3.bf16.msra.mxu1 %v1494_v2 }
 0x430   :  { %v1370_v17 = vpop.f32.mrb[16].mxu1 }
 0x431   :  { %v757_v19 = vpop.f32.mrb[17].mxu1  ;;  %v766_v21 = vadd.f32 %v1370_v17, %v1146_v18 }
 0x432   :  { %v1371_v20 = vpop.f32.mrb[18].mxu1  ;;  %v758_v24 = vadd.f32 %v1146_v18, %v757_v19 }
 0x433   :  { %v769_v22 = vadd.f32 %v1371_v20, %v1146_v18  ;;  %v760_v23 = vpop.f32.mrb[19].mxu1 }
 0x434   :  { %v761_v25 = vadd.f32 %v1146_v18, %v760_v23 }
 0x435   :  { %v821_v26 = vpack.c.bf16 %v769_v22, %v766_v21 }
 0x436   :  { %v820_v27 = vpack.c.bf16 %v761_v25, %v758_v24 }
 0x438   :  { %v1374_v28 = vpop.f32.mrb[20].mxu1  ;;  %1385 = vmatpush3.bf16.msra.mxu0 %v820_v27 }
 0x439   :  { %v773_v29 = vpop.f32.mrb[21].mxu1  ;;  %1386 = vmatprep.subr.bf16.mxu0 %v1675_v16  ;;  %v782_v31 = vadd.f32 %v1374_v28, %v1146_v18 }
 0x43a   :  { %v1375_v30 = vpop.f32.mrb[22].mxu1  ;;  %v774_v34 = vadd.f32 %v1146_v18, %v773_v29 }
 0x43b   :  { %v785_v32 = vadd.f32 %v1375_v30, %v1146_v18  ;;  %v776_v33 = vpop.f32.mrb[23].mxu1 }
 0x43c   :  { %v777_v35 = vadd.f32 %v1146_v18, %v776_v33  ;;  %1387 = vmatpush3.bf16.msra.mxu0 %v821_v26 }
 0x43d   :  { %v823_v36 = vpack.c.bf16 %v785_v32, %v782_v31  ;;  %1388 = vmatprep.subr.bf16.mxu0 %v1675_v16 }
 0x43e   :  { %v822_v37 = vpack.c.bf16 %v777_v35, %v774_v34 }
 0x440   :  { %v1378_v38 = vpop.f32.mrb[24].mxu1  ;;  %1389 = vmatpush3.bf16.msra.mxu0 %v822_v37 }
 0x441   :  { %v789_v39 = vpop.f32.mrb[25].mxu1  ;;  %1390 = vmatprep.subr.bf16.mxu0 %v1675_v16  ;;  %v798_v41 = vadd.f32 %v1378_v38, %v1146_v18 }
 0x442   :  { %v1379_v40 = vpop.f32.mrb[26].mxu1  ;;  %v790_v44 = vadd.f32 %v1146_v18, %v789_v39 }
 0x443   :  { %v801_v42 = vadd.f32 %v1379_v40, %v1146_v18  ;;  %v792_v43 = vpop.f32.mrb[27].mxu1 }
 0x444   :  { %v793_v45 = vadd.f32 %v1146_v18, %v792_v43  ;;  %1391 = vmatpush3.bf16.msra.mxu0 %v823_v36 }
 0x445   :  { %v825_v46 = vpack.c.bf16 %v801_v42, %v798_v41  ;;  %1392 = vmatprep.subr.bf16.mxu0 %v1675_v16 }
 0x446   :  { %v824_v54 = vpack.c.bf16 %v793_v45, %v790_v44 }
 0x448   :  { %v1382_v55 = vpop.f32.mrb[28].mxu1  ;;  %1393 = vmatpush3.bf16.msra.mxu0 %v824_v54 }
 0x449   :  { %v805_v57 = vpop.f32.mrb[29].mxu1  ;;  %1394 = vmatprep.subr.bf16.mxu0 %v1675_v16  ;;  %v814_v59 = vadd.f32 %v1382_v55, %v1146_v18 }
 0x44a   :  { %v1383_v58 = vpop.f32.mrb[30].mxu1  ;;  %v806_v62 = vadd.f32 %v1146_v18, %v805_v57 }
 0x44b   :  { %v817_v60 = vadd.f32 %v1383_v58, %v1146_v18  ;;  %v808_v61 = vpop.f32.mrb[31].mxu1 }
 0x44c   :  { %v809_v63 = vadd.f32 %v1146_v18, %v808_v61  ;;  %1395 = vmatpush3.bf16.msra.mxu0 %v825_v46  ;;  %v1156_v18 = vld [vmem:[%s1948_s10] ss:$0 sm:$0xff] }
 0x44d   :  { %v827_v0 = vpack.c.bf16 %v817_v60, %v814_v59  ;;  %1396 = vmatprep.subr.bf16.mxu0 %v1675_v16 }
 0x44e   :  { %v826_v56 = vpack.c.bf16 %v809_v63, %v806_v62 }
 0x450   :  { %1397 = vmatpush3.bf16.msra.mxu0 %v826_v56 }
 0x451   :  { %1398 = vmatprep.subr.bf16.mxu0 %v1675_v16 }
 0x454   :  { %1399 = vmatpush3.bf16.msra.mxu0 %v827_v0 }
 0x455   :  { %1424 = vmatprep.subr.bf16.mxu0 %v1675_v16 }
 0x457   :  { %1401 = vmatmul.mubr.bf16.vlgmr.msra.gmra.mrb[32].mxu0 %v828_v1 }
 0x458   :  { %1440 = vmatprep.mubr.msk.bf16.mxu0 %vm1676_vm0, %v1675_v16  ;;  %1425 = vmatpush3.bf16.msra.mxu0 %v1495_v3 }
 0x459   :  { %1426 = vmatprep.subr.bf16.mxu0 %v1675_v16 }
 0x45c   :  { %1427 = vmatpush3.bf16.msra.mxu0 %v1496_v4 }
 0x45d   :  { %1428 = vmatprep.subr.bf16.mxu0 %v1675_v16 }
 0x460   :  { %1429 = vmatpush3.bf16.msra.mxu0 %v1497_v5 }
 0x461   :  { %1430 = vmatprep.subr.bf16.mxu0 %v1675_v16 }
 0x464   :  { %1431 = vmatpush3.bf16.msra.mxu0 %v1498_v6 }
 0x465   :  { %1432 = vmatprep.subr.bf16.mxu0 %v1675_v16 }
 0x468   :  { %1433 = vmatpush3.bf16.msra.mxu0 %v1499_v7 }
 0x469   :  { %1434 = vmatprep.subr.bf16.mxu0 %v1675_v16 }
 0x46c   :  { %1435 = vmatpush3.bf16.msra.mxu0 %v1500_v8 }
 0x46d   :  { %1436 = vmatprep.subr.bf16.mxu0 %v1675_v16 }
 0x470   :  { %1437 = vmatpush3.bf16.msra.mxu0 %v1501_v14 }
 0x471   :  { %1438 = vmatprep.subr.bf16.mxu0 %v1675_v16 }
 0x474   :  { %1439 = vmatpush3.bf16.msra.mxu0 %v1502_v15 }
 0x52a   :  { %v863_v9 = vpop.f32.mrb[32].mxu0 }
 0x52b   :  { %v869_v10 = vpack.c.bf16 %v863_v9, %v863_v9  ;;  %v1402_v11 = vpop.f32.mrb[33].mxu0 }
 0x52c   :  { %v866_v12 = vpop.f32.mrb[34].mxu0 }
 0x52d   :  { %v1403_v13 = vpop.f32.mrb[35].mxu0  ;;  %1421 = vmatmul.mubr.bf16.vlgmr.msra.gmra.mrb[32].mxu1 %v869_v10 }
 0x600   :  { %v975_v48 = vpop.f32.mrb[32].mxu1 }
 0x601   :  { %v976_v49 = vadd.f32 %v1147_v47, %v975_v48  ;;  %v1422_v50 = vpop.f32.mrb[33].mxu1 }
 0x602   :  { %v978_v51 = vpop.f32.mrb[34].mxu1 }
 0x603   :  { %v981_v52 = vmax.f32 %v976_v49, 0.0  ;;  %v1423_v53 = vpop.f32.mrb[35].mxu1 }
 0x605   :  { %v982_v17 = vpack.c.bf16 %v981_v52, %v981_v52 }
 0x607   :  { %1441 = vmatmul.mubr.bf16.vlgmr.msra.gmra.mrb[36].mxu0 %v982_v17 }
 0x6da   :  { %v1088_v16 = vpop.f32.mrb[36].mxu0 }
 0x6db   :  { %v1089_v19 = vadd.f32 %v1156_v18, %v1088_v16  ;;  %v1442_v20 = vpop.f32.mrb[37].mxu0 }
 0x6dc   :  { %v1091_v21 = vpop.f32.mrb[38].mxu0 }
 0x6dd   :  { %1094 = vst [vmem:[#allocation13] sm:$0xff] %v1089_v19  ;;  %v1443_v22 = vpop.f32.mrb[39].mxu0 }
 0x6de   :  { %1646 = shalt.err (!%p1643_p10)
}
 0x6df   :  { %s1647_s10 = scalar_lea.hbm %s1949_s11, 128 }
 0x6e0   :  { %p1648_p11 = scmp.ne.s32.totalorder %s1949_s11, %s1647_s10  ;;  %p1651_p12 = scmp.lt.u32.totalorder %s1647_s10, %s1949_s11 }
 0x6e2   :  { %p1653_p13 = pnand %p1651_p12, %p1648_p11 }
 0x6e4   :  { %1656 = shalt.err (!%p1653_p13)
}
 0x6e5   :  { %1104 = dma.vmem_to_hbm [thread:$0]  %s1102_s20, 128, %s1949_s11, [#allocation4]  }
 0x6e6   :  { %1665 = dma.done.wait [#allocation4], 128  }
 0x6e7   :  { %1666 = vsyncadd [#allocation4], 4294967168 }
 0x6e8   :  { %1108 = vsyncpa [#allocation3], 1 }
 0x6e9   :  { %1109 = vsyncpa [#allocation6], 1 }
 0x6ea   :  { %1110 = vsyncpa [#allocation9], 1 }
 0x6eb   :  { %1111 = vsyncpa [#allocation12], 1 }
 0x6ec   :  { %1112 = vsyncpa [#allocation4], 1 }

</bundles_post_ra>
